<compile_context>
chip_gen: v7x
topology: tpu7x:2x2x1
jax: 0.10.0
libtpu: 0.0.40
codegen_flags: <defaults>
</compile_context>

<pallas_src>
import jax
import jax.numpy as jnp
from jax.experimental import pallas as pl
from jax.experimental.pallas import tpu as pltpu


def _round_up(n: int, m: int) -> int:
    return ((n + m - 1) // m) * m


def _cdiv(n: int, m: int) -> int:
    return (n + m - 1) // m


def _make_baseline_kernel(window: int):
    inv_w = 1.0 / float(window)  # static window -> compile-time constant

    def kernel(p_ref, o_ref):
        # p_ref: (window, tb) f32 -- time on sublanes, batch on lanes (lane-dense)
        p = p_ref[...]
        sma = jnp.sum(p, axis=0, keepdims=True) * inv_w        # (1, tb) sublane reduce
        current = p[window - 1:window, :]                      # (1, tb) last timestep
        o_ref[...] = jnp.where(current > sma,
                               jnp.float32(1.0),
                               jnp.float32(-1.0)).astype(o_ref.dtype)

    return kernel


def baseline_model_forward(x: jax.Array, window_size: int = 20,
                           batch_tile: int = 16384) -> jax.Array:
    """JAX/Pallas equivalent of BaselineModel.forward.

    x: (batch, seq, features) float32
    returns: (batch, 1) float32 with values in {+1.0, -1.0}
    """
    assert x.ndim == 3
    B, S, _F = x.shape
    assert B >= 1 and S >= 1 and window_size >= 1
    # PyTorch's `[-window_size:]` silently uses fewer elements when S < window_size.
    W = min(window_size, S)

    # Glue: only the trailing window of feature 0 is materialized (tiny vs the full
    # (B, S, F) array), transposed so batch lands on the lane axis.
    prices_t = jnp.transpose(x[:, S - W:, 0]).astype(jnp.float32)   # (W, B)

    # Pad the lane axis at most to the next multiple of 128 (fuses with the
    # transpose); no pad-to-tile-multiple copy.
    B128 = _round_up(B, 128)
    if B128 != B:
        prices_t = jnp.pad(prices_t, ((0, 0), (0, B128 - B)))

    # Tile/grid sizing:
    #  * per-step bytes ~ W*tb*4 large enough to amortize per-step overhead,
    #  * at least 2 tiles when the batch allows it (v7x dual-TensorCore sharding),
    #  * tb capped so double-buffered VMEM stays ~10 MiB even at the cap.
    n_tiles = _cdiv(B128, batch_tile)
    if B128 >= 256:
        n_tiles = max(n_tiles, 2)
    tb = min(_round_up(_cdiv(B128, n_tiles), 128), 65536)
    n_tiles = _cdiv(B128, tb)   # trailing partial block handled by Pallas masking

    kernel = _make_baseline_kernel(W)
    cost = pl.CostEstimate(
        flops=W * B128 + B128,
        transcendentals=0,
        bytes_accessed=(W * B128 + B128) * 4,
    )

    out = pl.pallas_call(
        kernel,
        out_shape=jax.ShapeDtypeStruct((1, B128), jnp.float32),
        grid=(n_tiles,),
        in_specs=[pl.BlockSpec((W, tb), lambda i: (0, i))],
        out_specs=pl.BlockSpec((1, tb), lambda i: (0, i)),
        compiler_params=pltpu.CompilerParams(
            dimension_semantics=("parallel",),
            vmem_limit_bytes=32 * 1024 * 1024,  # v5e scoped default is only 16 MiB
        ),
        cost_estimate=cost,
    )(prices_t)

    return out[0, :B][:, None]


def _reference(x: jnp.ndarray, window_size: int = 20) -> jnp.ndarray:
    prices = x[:, :, 0]
    W = min(window_size, prices.shape[1])
    sma = jnp.mean(prices[:, prices.shape[1] - W:], axis=1)
    current_price = prices[:, -1]
    signal = jnp.where(current_price > sma, 1.0, -1.0)
    return signal[:, None]


def _check(out: jnp.ndarray, x: jnp.ndarray, window_size: int) -> None:
    ref = _reference(x, window_size)
    assert out.shape == ref.shape, (out.shape, ref.shape)
    # Tie-tolerant comparison: sign may legitimately differ from the reference when
    # current price and SMA agree to within reduction-order rounding.
    prices = x[:, :, 0]
    W = min(window_size, prices.shape[1])
    sma = jnp.mean(prices[:, prices.shape[1] - W:], axis=1)
    margin = jnp.abs(prices[:, -1] - sma)
    near_tie = margin <= 1e-5 * (1.0 + jnp.abs(sma))
    ok = (out[:, 0] == ref[:, 0]) | near_tie
    assert bool(jnp.all(ok)), (out, ref)
    assert bool(jnp.all(jnp.abs(out) == 1.0))


if __name__ == "__main__":
    key = jax.random.PRNGKey(0)
    window_size = 20

    # Case 1: tiny batch (single tile, lane padding / trimming path).
    x = jax.random.normal(key, (2, 32, 4), dtype=jnp.float32)
    out = jax.block_until_ready(baseline_model_forward(x, window_size=window_size))
    _check(out, x, window_size)

    # Case 2: odd batch, seq longer than the window.
    x2 = jax.random.normal(jax.random.PRNGKey(0), (5, 64, 4), dtype=jnp.float32)
    out2 = jax.block_until_ready(baseline_model_forward(x2, window_size=window_size))
    _check(out2, x2, window_size)

    # Case 3: multi-tile grid with a partial trailing block (exercises >=2 tiles
    # and Pallas edge masking). Still small.
    x3 = jax.random.normal(jax.random.PRNGKey(0), (384, 32, 4), dtype=jnp.float32)
    out3 = jax.block_until_ready(baseline_model_forward(x3, window_size=window_size))
    _check(out3, x3, window_size)

    print("KERNEL_OK")
</pallas_src>

<mosaic_0001>
module attributes {stable_mosaic.version = 11 : i64} {
  func.func @kernel(%arg0: i32, %arg1: memref<20x128xf32, #tpu.memory_space<vmem>>, %arg2: memref<1x128xf32, #tpu.memory_space<vmem>>) attributes {dimension_semantics = [#tpu.dimension_semantics<parallel>], iteration_bounds = array<i64: 1>, scalar_prefetch = 0 : i64, scratch_operands = 0 : i64, tpu.core_type = #tpu.core_type<tc>, window_params = [{transform_indices = @transform_0, window_bounds = array<i64: 20, 128>}, {transform_indices = @transform_1, window_bounds = array<i64: 1, 128>}]} {
    %c0 = arith.constant 0 : index
    %c0_0 = arith.constant 0 : index
    %0 = vector.load %arg1[%c0, %c0_0] : memref<20x128xf32, #tpu.memory_space<vmem>>, vector<20x128xf32>
    %cst = arith.constant dense<0.000000e+00> : vector<128xf32>
    %1 = vector.multi_reduction <add>, %0, %cst [0] : vector<20x128xf32> to vector<128xf32>
    %2 = vector.shape_cast %1 : vector<128xf32> to vector<1x128xf32>
    %cst_1 = arith.constant 5.000000e-02 : f32
    %3 = vector.broadcast %cst_1 : f32 to vector<1x128xf32>
    %4 = arith.mulf %2, %3 : vector<1x128xf32>
    %5 = vector.extract_strided_slice %0 {offsets = [19, 0], sizes = [1, 128], strides = [1, 1]} : vector<20x128xf32> to vector<1x128xf32>
    %6 = arith.cmpf ogt, %5, %4 : vector<1x128xf32>
    %cst_2 = arith.constant 1.000000e+00 : f32
    %cst_3 = arith.constant -1.000000e+00 : f32
    %7 = vector.broadcast %cst_2 : f32 to vector<1x128xf32>
    %8 = vector.broadcast %cst_3 : f32 to vector<1x128xf32>
    %9 = arith.select %6, %7, %8 : vector<1x128xi1>, vector<1x128xf32>
    %c0_4 = arith.constant 0 : index
    %c0_5 = arith.constant 0 : index
    %10 = vector.load %arg2[%c0_4, %c0_5] : memref<1x128xf32, #tpu.memory_space<vmem>>, vector<1x128xf32>
    tpu.vector_store %arg2[%c0_4, %c0_5], %9 {strides = array<i32>} : memref<1x128xf32, #tpu.memory_space<vmem>>, vector<1x128xf32>,
    return
  }
  func.func @transform_0(%arg0: i32) -> (i32, i32) {
    %c0_i32 = arith.constant 0 : i32
    %c0_i32_0 = arith.constant 0 : i32
    return %c0_i32, %arg0 : i32, i32
  }
  func.func @transform_1(%arg0: i32) -> (i32, i32) {
    %c0_i32 = arith.constant 0 : i32
    %c0_i32_0 = arith.constant 0 : i32
    return %c0_i32, %arg0 : i32, i32
  }
}

</mosaic_0001>

<bundles_post_ra>
// kernel: tpu_custom_call.1
= control target key start
LH: loop header
LB: loop body
LE: loop exit
PB: predicated region body
PF: predicated region fallthrough
CT: control target
= control target key end

     0   :  { %6 = vsyncpa [#allocation3], 0  ;;  %s147_s0 = inlined_call_operand.hbm [shape: f32[20,128], index: 0, kind: input, shape index: {}]   ;;  %s148_s1 = inlined_call_operand.hbm [shape: f32[1,128], index: 1, kind: output, shape index: {}]  }
   0x1   :  { %7 = vsyncpa [#allocation4], 0  ;;  %s108_s6 = smov [#allocation2]   ;;  %s60_s10 = scalar_lea.hbm %s147_s0, 384 }
   0x2   :  { %s13_s7 = sshll.u32 %s108_s6, 4  ;;  %p61_p0 = scmp.ne.s32.totalorder %s147_s0, %s60_s10  ;;  %s14_s7 = int_to_ptr.vmem [resolvable:$true] %s13_s7 }
   0x3   :  { %p64_p1 = scmp.lt.u32.totalorder %s60_s10, %s147_s0 }
   0x5   :  { %p66_p2 = pnand %p64_p1, %p61_p0 }
   0x7   :  { %69 = shalt.err (!%p66_p2)
}
   0x8   :  { %s70_s15 = scalar_lea.vmem %s14_s7, 384  ;;  %p75_p4 = scmp.lt.s32.totalorder %s14_s7, %s14_s7 }
   0x9   :  { %p71_p3 = scmp.ne.s32.totalorder %s14_s7, %s70_s15  ;;  %p76_p5 = scmp.lt.s32.totalorder %s70_s15, %s70_s15 }
   0xb   :  { %p77_p6 = por %p76_p5, %p75_p4 }
   0xd   :  { %p78_p7 = pnand %p77_p6, %p71_p3 }
   0xf   :  { %81 = shalt.err (!%p78_p7)
}
  0x10   :  { %s109_s16 = smov 128   ;;  %s110_s17 = smov 8  }
  0x11   :  { %19 = dma.hbm_to_vmem [thread:$0]  %s147_s0, 384, %s14_s7, [#allocation3], %s109_s16, %s109_s16, %s110_s17  }
  0x12   :  { %104 = dma.done.wait [#allocation3], 384  }
  0x13   :  { %105 = vsyncadd [#allocation3], 4294966912  ;;  %vm27_vm0 = vcmask 1043456   ;;  %v23_v0 = vld [vmem:[#allocation2] sm:$0xff]  ;;  %v24_v1 = vld [vmem:[#allocation2 + $0x8] sm:$0xff]  ;;  %s111_s20 = smov [#allocation5]  }
  0x14   :  { %v25_v2 = vld [vmem:[#allocation2 + $0x10] sm:$0xf]  ;;  %v26_v3 = vadd.f32 %v24_v1, %v23_v0  ;;  %s46_s21 = sshll.u32 %s111_s20, 4  ;;  %v112_v13 = vmov -1.0   ;;  %s47_s21 = int_to_ptr.vmem [resolvable:$true] %s46_s21 }
  0x15   :  { %v28_v4 = vsel %vm27_vm0, %v25_v2, 0.0  ;;  %s82_s0 = scalar_lea.vmem %s47_s21, 16  ;;  %s86_s22 = scalar_lea.vmem %s47_s21, 32 }
  0x16   :  { %v29_v5 = vadd.f32 %v28_v4, %v26_v3  ;;  %p83_p8 = scmp.ne.s32.totalorder %s47_s21, %s82_s0  ;;  %p87_p9 = scmp.lt.s32.totalorder %s47_s21, %s47_s21 }
  0x17   :  { %p88_p10 = scmp.lt.s32.totalorder %s86_s22, %s82_s0 }
  0x18   :  { %v30_v6 = vrot.slane %v29_v5, 4 }
  0x19   :  { %p89_p11 = por %p88_p10, %p87_p9 }
  0x1a   :  { %v31_v7 = vadd.f32 %v30_v6, %v29_v5 }
  0x1b   :  { %p90_p12 = pnand %p89_p11, %p83_p8 }
  0x1c   :  { %v32_v8 = vrot.slane %v31_v7, 2 }
  0x1e   :  { %v33_v9 = vadd.f32 %v32_v8, %v31_v7 }
  0x20   :  { %v34_v10 = vrot.slane %v33_v9, 1 }
  0x22   :  { %v35_v11 = vadd.f32 %v34_v10, %v33_v9 }
  0x24   :  { %v36_v12 = vmul.f32 0.05, %v35_v11 }
  0x26   :  { %vm37_vm1 = vcmp.gt.f32.partialorder %v25_v2, %v36_v12 }
  0x27   :  { %v38_v14 = vsel %vm37_vm1, 1.0, %v112_v13 }
  0x28   :  { %39 = vst [vmem:[#allocation5 - $0x3] sm:$0x8] %v38_v14 }
  0x29   :  { %93 = shalt.err (!%p90_p12)
}
  0x2a   :  { %s94_s25 = scalar_lea.hbm %s148_s1, 16 }
  0x2b   :  { %p95_p13 = scmp.ne.s32.totalorder %s148_s1, %s94_s25  ;;  %p98_p0 = scmp.lt.u32.totalorder %s94_s25, %s148_s1 }
  0x2d   :  { %p100_p1 = pnand %p98_p0, %p95_p13 }
  0x2f   :  { %103 = shalt.err (!%p100_p1)
}
  0x30   :  { %49 = dma.vmem_to_hbm [thread:$0]  %s47_s21, 16, %s148_s1, [#allocation4]  }
  0x31   :  { %106 = dma.done.wait [#allocation4], 16  }
  0x32   :  { %107 = vsyncadd [#allocation4], 4294967280 }
  0x33   :  { %53 = vsyncpa [#allocation3], 1 }
  0x34   :  { %54 = vsyncpa [#allocation4], 1 }

</bundles_post_ra>
